<compile_context>
chip_gen: v5e
topology: v5e:2x2
jax: 0.10.0
libtpu: 0.0.40
codegen_flags: <defaults>
</compile_context>

<pallas_src>
import functools

import jax
import jax.numpy as jnp
from jax.experimental import pallas as pl
from jax.experimental.pallas import tpu as pltpu

EPS = 1e-5


# ---------------------------------------------------------------------------
# pltpu.roll rotation-direction calibration (run once, eagerly), so the kernel
# is robust to convention differences across JAX versions.
# ---------------------------------------------------------------------------
@functools.lru_cache(maxsize=None)
def _roll_sign():
    """Returns s such that pltpu.roll(x, (s*k) % n, axis) == jnp.roll(x, k, axis)."""

    def probe(x_ref, o_ref):
        o_ref[...] = pltpu.roll(x_ref[...], 1, axis=0)

    x = jnp.arange(8 * 128, dtype=jnp.float32).reshape(8, 128)
    y = pl.pallas_call(probe,
                       out_shape=jax.ShapeDtypeStruct((8, 128), jnp.float32))(x)
    if bool(jnp.array_equal(y, jnp.roll(x, 1, axis=0))):
        return 1
    if bool(jnp.array_equal(y, jnp.roll(x, -1, axis=0))):
        return -1
    raise RuntimeError("unexpected pltpu.roll semantics")


def _round_up(n, m):
    return (n + m - 1) // m * m


# ---------------------------------------------------------------------------
# Fused ResBlock Pallas kernel.
# ---------------------------------------------------------------------------
def _make_resblock_kernel(H, W, C, compute_dtype):
    HW = H * W
    inv_n = 1.0 / float(HW)
    sign = _roll_sign()
    w_pow2 = (W & (W - 1)) == 0

    def rollr(t, k):
        # == jnp.roll(t, k, axis=0), independent of pltpu.roll's direction.
        return pltpu.roll(t, (sign * k) % HW, axis=0)

    def conv3x3(src, w_ref, masks):
        # src: (HW, C) f32.  w_ref: (9, C, C), tap-major (dy, dx), Cin -> Cout.
        # Each reflection-padded tap is generated just-in-time (XLU roll + VPU
        # select) and immediately consumed by one MXU matmul; the 9 partials
        # accumulate into a single f32 (HW, C) value — no (HW, 9C) concat.
        top, bot, left, right = masks
        up = rollr(src, W)                 # row r-1 (wraps at row 0)
        dn = rollr(src, -W)                # row r+1 (wraps at row H-1)
        U = jnp.where(top, dn, up)         # reflect: row -1 -> row 1
        D = jnp.where(bot, up, dn)         # reflect: row H  -> row H-2
        acc = None
        for gi, t in enumerate((U, src, D)):
            tl = rollr(t, 1)               # col c-1 (wrap garbage at col 0)
            tr = rollr(t, -1)              # col c+1 (wrap garbage at col W-1)
            L = jnp.where(left, tr, tl)    # reflect: col -1 -> col 1
            R = jnp.where(right, tl, tr)   # reflect: col W  -> col W-2
            # TODO(synk): on v6e/v7x, cast U/src/D to bf16 *before* the column
            # rolls/selects (3 casts instead of 9) once packed-sublane rolls by
            # odd shifts are confirmed cheap; keep f32 selects on v5e.
            for dj, tap in enumerate((L, t, R)):
                part = jnp.dot(tap.astype(compute_dtype), w_ref[3 * gi + dj],
                               preferred_element_type=jnp.float32)
                acc = part if acc is None else acc + part
        return acc

    def inorm(a):
        # Two-pass, non-affine InstanceNorm; all stats strictly in f32.
        mean = jnp.sum(a, axis=0, keepdims=True) * inv_n
        d = a - mean
        var = jnp.sum(d * d, axis=0, keepdims=True) * inv_n
        return d * jax.lax.rsqrt(var + EPS)

    def kernel(x_ref, w1_ref, w2_ref, o_ref):
        # Reflection-border masks: built once per image from an in-kernel iota
        # (no extra DMA streams) and hoisted so the 16 selects below do not
        # each re-broadcast a (HW, 1) mask.
        p = jax.lax.broadcasted_iota(jnp.int32, (HW, C), 0)   # flat pixel idx
        cmod = (p & (W - 1)) if w_pow2 else (p % W)
        masks = (p < W,                    # top    (row == 0)
                 p >= HW - W,              # bottom (row == H-1)
                 cmod == 0,                # left   (col == 0)
                 cmod == W - 1)            # right  (col == W-1)

        x = x_ref[0].astype(jnp.float32)                      # (HW, C)

        # conv1 + IN + ReLU.  Conv bias dropped: it cancels exactly under the
        # non-affine InstanceNorm that follows.
        h = jnp.maximum(inorm(conv3x3(x, w1_ref, masks)), 0.0)
        # conv2 + IN, then residual add (f32).
        h = inorm(conv3x3(h, w2_ref, masks))
        o_ref[0] = (x + h).astype(o_ref.dtype)

    return kernel


def resblock_pallas(x_nhwc, w1, w2, *, compute_dtype=jnp.bfloat16):
    """Fused ResBlock.  x_nhwc: (B, H, W, C) f32.  w1, w2: (C, C, 3, 3) in
    PyTorch (Cout, Cin, kh, kw) layout.  Conv biases are intentionally not
    taken: they cancel under the non-affine InstanceNorm."""
    B, H, W, C = x_nhwc.shape
    assert H >= 2 and W >= 2, "ReflectionPad2d(1) needs H, W >= 2"
    Cp = _round_up(C, 128)          # lane-dense channel count
    HW = H * W

    def prep_w(w):
        wk = jnp.transpose(w, (2, 3, 1, 0))            # (kh, kw, Cin, Cout)
        if Cp != C:
            wk = jnp.pad(wk, ((0, 0), (0, 0), (0, Cp - C), (0, Cp - C)))
        return wk.reshape(9, Cp, Cp).astype(compute_dtype)

    w1k = prep_w(w1)
    w2k = prep_w(w2)

    xp = x_nhwc if Cp == C else jnp.pad(
        x_nhwc, ((0, 0), (0, 0), (0, 0), (0, Cp - C)))
    xf = xp.reshape(B, HW, Cp)

    w_bytes = 2 * 9 * Cp * Cp * jnp.dtype(compute_dtype).itemsize
    io_bytes = 2 * B * HW * Cp * xf.dtype.itemsize
    cost = pl.CostEstimate(
        flops=4 * B * HW * 9 * Cp * Cp,       # 2 convs * 2 * HW * (9Cp) * Cp
        transcendentals=2 * B * Cp,           # one rsqrt per (conv, channel)
        bytes_accessed=io_bytes + w_bytes)

    kernel = _make_resblock_kernel(H, W, Cp, compute_dtype)
    out = pl.pallas_call(
        kernel,
        out_shape=jax.ShapeDtypeStruct((B, HW, Cp), x_nhwc.dtype),
        grid=(B,),
        in_specs=[
            pl.BlockSpec((1, HW, Cp), lambda b: (b, 0, 0)),
            # Grid-invariant weights: whole-array, single-buffered VMEM
            # residents (no double-buffered pipelining, no per-step re-fetch).
            pl.BlockSpec(memory_space=pltpu.MemorySpace.VMEM),
            pl.BlockSpec(memory_space=pltpu.MemorySpace.VMEM),
        ],
        out_specs=pl.BlockSpec((1, HW, Cp), lambda b: (b, 0, 0)),
        compiler_params=pltpu.CompilerParams(
            dimension_semantics=("parallel",),
            vmem_limit_bytes=48 * 1024 * 1024,
        ),
        cost_estimate=cost,
    )(xf, w1k, w2k)

    out = out.reshape(B, H, W, Cp)
    return out if Cp == C else out[..., :C]


def resblock_nchw(x_nchw, w1, b1, w2, b2, *, compute_dtype=jnp.bfloat16):
    """PyTorch-layout entry point.  NOTE: per-channel conv biases b1/b2 are
    accepted for API parity but deliberately UNUSED — this is only correct
    because a non-affine InstanceNorm immediately follows each conv (the mean
    subtraction cancels the bias).  If affine IN params are added or the block
    is reordered, the biases must be plumbed back into the kernel."""
    del b1, b2
    x = jnp.transpose(x_nchw, (0, 2, 3, 1))
    y = resblock_pallas(x, w1, w2, compute_dtype=compute_dtype)
    return jnp.transpose(y, (0, 3, 1, 2))


# ---------------------------------------------------------------------------
# Plain-JAX helpers (reference ResBlock + the non-ResBlock GNet layers).
# ---------------------------------------------------------------------------
def _reflect_pad(x, p):
    return jnp.pad(x, ((0, 0), (p, p), (p, p), (0, 0)), mode="reflect")


def _instance_norm_nhwc(x):
    m = jnp.mean(x, axis=(1, 2), keepdims=True)
    v = jnp.mean(jnp.square(x - m), axis=(1, 2), keepdims=True)
    return (x - m) * jax.lax.rsqrt(v + EPS)


def _conv2d_nhwc(x, w, b, stride=1, padding="VALID"):
    # w: (Cout, Cin, kh, kw)  — PyTorch layout.
    y = jax.lax.conv_general_dilated(
        x, jnp.transpose(w, (2, 3, 1, 0)),
        window_strides=(stride, stride), padding=padding,
        dimension_numbers=("NHWC", "HWIO", "NHWC"))
    return y + b.reshape(1, 1, 1, -1)


def _conv_transpose2d_nhwc(x, w, b):
    # PyTorch ConvTranspose2d(k=3, stride=2, padding=1, output_padding=1);
    # w: (Cin, Cout, 3, 3).  Equivalent: dilate input by 2, pad (1, 2), then
    # correlate with the spatially flipped kernel.
    wk = jnp.transpose(w, (2, 3, 0, 1))[::-1, ::-1]    # (kh, kw, Cin, Cout)
    y = jax.lax.conv_general_dilated(
        x, wk, window_strides=(1, 1), padding=((1, 2), (1, 2)),
        lhs_dilation=(2, 2), dimension_numbers=("NHWC", "HWIO", "NHWC"))
    return y + b.reshape(1, 1, 1, -1)


def resblock_ref_nhwc(x, w1, b1, w2, b2):
    h = _conv2d_nhwc(_reflect_pad(x, 1), w1, b1)
    h = jnp.maximum(_instance_norm_nhwc(h), 0.0)
    h = _conv2d_nhwc(_reflect_pad(h, 1), w2, b2)
    return x + _instance_norm_nhwc(h)


# ---------------------------------------------------------------------------
# Full GNet forward (ResBlocks on the Pallas kernel, other blocks on XLA).
# ---------------------------------------------------------------------------
def init_gnet_params(key, n_init=32, depth=2, width=2):
    ks = iter(jax.random.split(key, 64))

    def conv(cout, cin, k):
        scale = 1.0 / float(cin * k * k) ** 0.5
        w = jax.random.normal(next(ks), (cout, cin, k, k), jnp.float32) * scale
        b = jax.random.normal(next(ks), (cout,), jnp.float32) * 0.1
        return w, b

    p = {"init": conv(n_init, 3, 7), "down": [], "res": [], "up": []}
    n_c = n_init
    for _ in range(depth):
        p["down"].append(conv(2 * n_c, n_c, 3))
        n_c *= 2
    for _ in range(width):
        w1, b1 = conv(n_c, n_c, 3)
        w2, b2 = conv(n_c, n_c, 3)
        p["res"].append((w1, b1, w2, b2))
    for _ in range(depth):
        scale = 1.0 / float(n_c * 9) ** 0.5
        w = jax.random.normal(next(ks), (n_c, n_c // 2, 3, 3), jnp.float32) * scale
        b = jax.random.normal(next(ks), (n_c // 2,), jnp.float32) * 0.1
        p["up"].append((w, b))
        n_c //= 2
    p["final"] = conv(3, n_c, 7)
    return p


def gnet_forward(params, x_nchw, *, use_pallas=True, compute_dtype=jnp.bfloat16):
    x = jnp.transpose(x_nchw, (0, 2, 3, 1))           # NHWC
    # GNetInitialBlock: ReflectionPad2d(3) -> Conv2d(3, n, 7) -> IN -> ReLU
    w, b = params["init"]
    x = jnp.maximum(_instance_norm_nhwc(_conv2d_nhwc(_reflect_pad(x, 3), w, b)), 0.0)
    # DownBlocks: Conv2d(n, 2n, 3, stride=2, padding=1) -> IN -> ReLU
    for (w, b) in params["down"]:
        x = jnp.maximum(_instance_norm_nhwc(
            _conv2d_nhwc(x, w, b, stride=2, padding=((1, 1), (1, 1)))), 0.0)
    # ResBlocks (fused Pallas kernel; bf16 matmuls are intentional — GAN
    # inference tolerance, accumulation stays f32 inside the kernel)
    for (w1, b1, w2, b2) in params["res"]:
        if use_pallas:
            x = resblock_pallas(x, w1, w2, compute_dtype=compute_dtype)
        else:
            x = resblock_ref_nhwc(x, w1, b1, w2, b2)
    # UpBlocks: ConvTranspose2d(n, n/2, 3, s=2, p=1, op=1) -> IN -> ReLU
    for (w, b) in params["up"]:
        x = jnp.maximum(_instance_norm_nhwc(_conv_transpose2d_nhwc(x, w, b)), 0.0)
    # GNetFinalBlock: ReflectionPad2d(3) -> Conv2d(n, 3, 7) -> Tanh
    w, b = params["final"]
    x = jnp.tanh(_conv2d_nhwc(_reflect_pad(x, 3), w, b))
    return jnp.transpose(x, (0, 3, 1, 2))


# ---------------------------------------------------------------------------
if __name__ == "__main__":
    _roll_sign()  # calibrate pltpu.roll direction eagerly, outside any jit

    key = jax.random.PRNGKey(0)
    k_res, k_gnet, k_xg = jax.random.split(key, 3)

    # ---- 1) Standalone ResBlock kernel (f32 compute, tight tolerance) vs the
    #         pure-JAX reference.  C=4 exercises the lane-padding to 128. ----
    B, C, H, W = 2, 4, 16, 16
    ks = jax.random.split(k_res, 5)
    x = jax.random.normal(ks[0], (B, C, H, W), jnp.float32)
    w1 = jax.random.normal(ks[1], (C, C, 3, 3), jnp.float32) * 0.1
    b1 = jax.random.normal(ks[2], (C,), jnp.float32) * 0.1
    w2 = jax.random.normal(ks[3], (C, C, 3, 3), jnp.float32) * 0.1
    b2 = jax.random.normal(ks[4], (C,), jnp.float32) * 0.1

    ref = jnp.transpose(
        resblock_ref_nhwc(jnp.transpose(x, (0, 2, 3, 1)), w1, b1, w2, b2),
        (0, 3, 1, 2))

    run_f32 = jax.jit(functools.partial(resblock_nchw, compute_dtype=jnp.float32))
    out32 = jax.block_until_ready(run_f32(x, w1, b1, w2, b2))
    assert out32.shape == (B, C, H, W)
    err32 = float(jnp.max(jnp.abs(out32 - ref)))
    assert err32 < 5e-3, f"f32 resblock mismatch: {err32}"

    # ---- 2) Full GNet forward with Pallas ResBlocks (bf16 matmuls; res
    #         channels = 128 -> naturally lane-dense) vs a pure-JAX GNet. ----
    params = init_gnet_params(k_gnet, n_init=32, depth=2, width=2)
    xg = jax.random.normal(k_xg, (2, 3, 32, 32), jnp.float32)

    gnet_pallas = jax.jit(lambda p, a: gnet_forward(p, a, use_pallas=True))
    gnet_jax = jax.jit(lambda p, a: gnet_forward(p, a, use_pallas=False))

    yp = jax.block_until_ready(gnet_pallas(params, xg))
    yr = jax.block_until_ready(gnet_jax(params, xg))
    assert yp.shape == (2, 3, 32, 32)
    errg = float(jnp.max(jnp.abs(yp - yr)))
    assert errg < 3e-1, f"GNet mismatch: {errg}"  # bf16 matmuls: intentional

    print("KERNEL_OK")
</pallas_src>

<mosaic_0001>
module attributes {stable_mosaic.version = 11 : i64} {
  func.func @probe(%arg0: memref<8x128xf32, #tpu.memory_space<vmem>>, %arg1: memref<8x128xf32, #tpu.memory_space<vmem>>) attributes {dimension_semantics = [], scalar_prefetch = 0 : i64, scratch_operands = 0 : i64, tpu.core_type = #tpu.core_type<tc>} {
    %c0 = arith.constant 0 : index
    %c0_0 = arith.constant 0 : index
    %0 = vector.load %arg0[%c0, %c0_0] : memref<8x128xf32, #tpu.memory_space<vmem>>, vector<8x128xf32>
    %c1_i32 = arith.constant 1 : i32
    %1 = tpu.dynamic_rotate %0 by %c1_i32 dim 0 : vector<8x128xf32>, i32 -> vector<8x128xf32>
    %c0_1 = arith.constant 0 : index
    %c0_2 = arith.constant 0 : index
    %2 = vector.load %arg1[%c0_1, %c0_2] : memref<8x128xf32, #tpu.memory_space<vmem>>, vector<8x128xf32>
    tpu.vector_store %arg1[%c0_1, %c0_2], %1 {strides = array<i32>} : memref<8x128xf32, #tpu.memory_space<vmem>>, vector<8x128xf32>,
    return
  }
}

</mosaic_0001>

<bundles_post_ra>
// kernel: tpu_custom_call.1
= control target key start
LH: loop header
LB: loop body
LE: loop exit
PB: predicated region body
PF: predicated region fallthrough
CT: control target
= control target key end

     0   :  { %6 = vsyncpa [#allocation3], 0  ;;  %s115_s0 = inlined_call_operand.hbm [shape: f32[8,128], index: 0, kind: input, shape index: {}]   ;;  %s116_s1 = inlined_call_operand.hbm [shape: f32[8,128], index: 1, kind: output, shape index: {}]  }
   0x1   :  { %7 = vsyncpa [#allocation4], 0  ;;  %s13_s8 = sshll.u32 %s115_s0, 4  ;;  %s97_s9 = smov [#allocation2]   ;;  %s14_s8 = int_to_ptr.hbm [resolvable:$true] %s13_s8 }
   0x2   :  { %s15_s10 = sshll.u32 %s97_s9, 4  ;;  %s16_s10 = int_to_ptr.vmem [resolvable:$true] %s15_s10 }
   0x3   :  { %18 = dma.hbm_to_vmem [thread:$0]  %s14_s8, 128, %s16_s10, [#allocation3]  }
   0x4   :  { %93 = dma.done.wait [#allocation3], 128  }
   0x5   :  { %94 = vsyncadd [#allocation3], 4294967168  ;;  %s98_s11 = smov [#allocation5]   ;;  %s33_s15 = sshll.u32 %s116_s1, 4  ;;  %v23_v0 = vld [vmem:[#allocation2] sm:$0xff]  ;;  %s34_s15 = int_to_ptr.hbm [resolvable:$true] %s33_s15 }
   0x6   :  { %s31_s12 = sshll.u32 %s98_s11, 4  ;;  %v24_v1 = vrot.slane %v23_v0, 7  ;;  %s32_s12 = int_to_ptr.vmem [resolvable:$true] %s31_s12 }
   0x8   :  { %25 = vst [vmem:[#allocation5] sm:$0xff] %v24_v1 }
   0x9   :  { %36 = dma.vmem_to_hbm [thread:$0]  %s32_s12, 128, %s34_s15, [#allocation4]  }
   0xa   :  { %95 = dma.done.wait [#allocation4], 128  }
   0xb   :  { %96 = vsyncadd [#allocation4], 4294967168 }
   0xc   :  { %41 = vsyncpa [#allocation3], 1 }
   0xd   :  { %42 = vsyncpa [#allocation4], 1 }

</bundles_post_ra>
